<compile_context>
chip_gen: v7x
topology: tpu7x:2x2x1
jax: 0.10.0
libtpu: 0.0.40
codegen_flags: <defaults>
</compile_context>

<pallas_src>
import jax
import jax.numpy as jnp
from jax import lax
from jax.experimental import pallas as pl
from jax.experimental.pallas import tpu as pltpu


def _general_score_kernel(states_ref, context_ref, w_ref, bias_ref, out_ref):
    # states_ref : (TB, T, H)  VMEM
    # context_ref: (TB, H)     VMEM
    # w_ref      : (H, H)      VMEM   -- weight[0] of the Bilinear layer
    # bias_ref   : (1,)        SMEM   -- scalar bias
    # out_ref    : (TB, T)     VMEM
    #
    # v[b, i] = sum_j context[b, j] * W[i, j]                    (MXU)
    v = lax.dot_general(
        context_ref[...], w_ref[...],
        dimension_numbers=(((1,), (1,)), ((), ())),
        preferred_element_type=jnp.float32)                      # (TB, H)
    # scores[b, t] = sum_i states[b, t, i] * v[b, i] + bias      (VPU + lane reduce)
    s = jnp.sum(states_ref[...].astype(jnp.float32) * v[:, None, :], axis=-1)
    out_ref[...] = (s + bias_ref[0]).astype(out_ref.dtype)


def _pick_batch_tile(B, T, H, itemsize, vmem_budget_bytes=8 << 20):
    """Largest batch tile (multiple of 8) whose double-buffered working set
    fits a conservative VMEM budget."""
    if B <= 8:
        return B
    # Per batch row: states (T*H) + context (H) + output (T), double-buffered,
    # plus f32 intermediates of roughly the same footprint.
    per_row = (T * H + H + T) * itemsize * 2 + (T * H + H) * 4
    tb = vmem_budget_bytes // max(per_row, 1)
    tb = min(tb, B)
    tb = max(8, (tb // 8) * 8)
    return int(tb)


def general_score(states, context, weight, bias, *, batch_tile=None):
    """Mirror of GeneralScore.forward.

    states : (B, T, H)   context : (B, H)
    weight : (H, H)      -- nn.Bilinear weight[0]
    bias   : (1,)        -- nn.Bilinear bias
    returns: (B, T, 1)
    """
    B, T, H = states.shape
    assert context.shape == (B, H)
    assert weight.shape == (H, H)
    bias = jnp.asarray(bias, dtype=jnp.float32).reshape(1)

    itemsize = jnp.dtype(states.dtype).itemsize
    if batch_tile is None:
        tb = _pick_batch_tile(B, T, H, itemsize)
    else:
        tb = B if B < batch_tile else batch_tile
    grid = (pl.cdiv(B, tb),)

    cost = pl.CostEstimate(
        flops=2 * B * H * H + 2 * B * T * H,
        transcendentals=0,
        bytes_accessed=(states.size + context.size + weight.size) * itemsize
                       + B * T * itemsize + 4)

    out = pl.pallas_call(
        _general_score_kernel,
        out_shape=jax.ShapeDtypeStruct((B, T), states.dtype),
        grid=grid,
        in_specs=[
            pl.BlockSpec((tb, T, H), lambda i: (i, 0, 0)),          # states tile
            pl.BlockSpec((tb, H), lambda i: (i, 0)),                # context tile
            pl.BlockSpec((H, H), lambda i: (0, 0)),                 # weight (resident)
            pl.BlockSpec(memory_space=pltpu.MemorySpace.SMEM),      # bias scalar
        ],
        out_specs=pl.BlockSpec((tb, T), lambda i: (i, 0)),
        compiler_params=pltpu.CompilerParams(
            dimension_semantics=("parallel",)),
        cost_estimate=cost,
    )(states, context, weight, bias)

    # nn.Bilinear(out_features=1) returns a trailing singleton dim; reshape is free.
    return out[..., None]


def _reference(states, context, weight, bias):
    v = jnp.einsum('bj,ij->bi', context, weight)            # (B, H)
    s = jnp.einsum('bti,bi->bt', states, v) + bias[0]       # (B, T)
    return s[..., None]                                     # (B, T, 1)


if __name__ == "__main__":
    key = jax.random.PRNGKey(0)
    k1, k2, k3, k4 = jax.random.split(key, 4)

    B, T, H = 16, 8, 32
    states = jax.random.normal(k1, (B, T, H), dtype=jnp.float32)
    context = jax.random.normal(k2, (B, H), dtype=jnp.float32)
    weight = jax.random.normal(k3, (H, H), dtype=jnp.float32) * 0.1
    bias = jax.random.normal(k4, (1,), dtype=jnp.float32)

    # Exercise the tiled path explicitly (grid of 2 batch tiles).
    out = general_score(states, context, weight, bias, batch_tile=8)
    out = jax.block_until_ready(out)

    ref = _reference(states, context, weight, bias)
    assert out.shape == (B, T, 1), out.shape
    assert jnp.allclose(out, ref, atol=1e-4, rtol=1e-4), "mismatch vs. pure-JAX reference"

    # Also exercise the auto-tile path (whole batch in one tile here).
    out2 = jax.block_until_ready(general_score(states, context, weight, bias))
    assert jnp.allclose(out2, ref, atol=1e-4, rtol=1e-4), "mismatch (auto tile)"

    print("KERNEL_OK")
</pallas_src>

<mosaic_0001>
module attributes {stable_mosaic.version = 11 : i64} {
  func.func @_general_score_kernel(%arg0: i32, %arg1: memref<8x8x32xf32, #tpu.memory_space<vmem>>, %arg2: memref<8x32xf32, #tpu.memory_space<vmem>>, %arg3: memref<32x32xf32, #tpu.memory_space<vmem>>, %arg4: memref<1xf32, #tpu.memory_space<smem>>, %arg5: memref<8x8xf32, #tpu.memory_space<vmem>>) attributes {dimension_semantics = [#tpu.dimension_semantics<parallel>], iteration_bounds = array<i64: 2>, scalar_prefetch = 0 : i64, scratch_operands = 0 : i64, tpu.core_type = #tpu.core_type<tc>, window_params = [{transform_indices = @transform_0, window_bounds = array<i64: 8, 8, 32>}, {transform_indices = @transform_1, window_bounds = array<i64: 8, 32>}, {pipeline_mode = #tpu.pipeline_mode<synchronous>, transform_indices = @transform_2, window_bounds = array<i64: 32, 32>}, {transform_indices = @transform_3, window_bounds = array<i64: 1>}, {transform_indices = @transform_4, window_bounds = array<i64: 8, 8>}]} {
    %c0 = arith.constant 0 : index
    %c0_0 = arith.constant 0 : index
    %0 = vector.load %arg2[%c0, %c0_0] : memref<8x32xf32, #tpu.memory_space<vmem>>, vector<8x32xf32>
    %c0_1 = arith.constant 0 : index
    %c0_2 = arith.constant 0 : index
    %1 = vector.load %arg3[%c0_1, %c0_2] : memref<32x32xf32, #tpu.memory_space<vmem>>, vector<32x32xf32>
    %cst = arith.constant dense<0.000000e+00> : vector<8x32xf32>
    %2 = tpu.matmul %0, %1, %cst {dimension_numbers = #tpu.dot_dimension_numbers<[1], [1], [0], [0], [0, 0, 1, 0], [], []>} : vector<8x32xf32>, vector<32x32xf32>, vector<8x32xf32> -> vector<8x32xf32>
    %c0_3 = arith.constant 0 : index
    %c0_4 = arith.constant 0 : index
    %c0_5 = arith.constant 0 : index
    %3 = vector.load %arg1[%c0_3, %c0_4, %c0_5] : memref<8x8x32xf32, #tpu.memory_space<vmem>>, vector<8x8x32xf32>
    %4 = vector.shape_cast %2 : vector<8x32xf32> to vector<8x1x32xf32>
    %5 = vector.broadcast %4 : vector<8x1x32xf32> to vector<8x8x32xf32>
    %6 = arith.mulf %3, %5 : vector<8x8x32xf32>
    %cst_6 = arith.constant dense<0.000000e+00> : vector<8x8xf32>
    %7 = vector.multi_reduction <add>, %6, %cst_6 [2] : vector<8x8x32xf32> to vector<8x8xf32>
    %c0_7 = arith.constant 0 : index
    %8 = memref.load %arg4[%c0_7] : memref<1xf32, #tpu.memory_space<smem>>
    %9 = vector.broadcast %8 : f32 to vector<8x8xf32>
    %10 = arith.addf %7, %9 : vector<8x8xf32>
    %c0_8 = arith.constant 0 : index
    %c0_9 = arith.constant 0 : index
    %11 = vector.load %arg5[%c0_8, %c0_9] : memref<8x8xf32, #tpu.memory_space<vmem>>, vector<8x8xf32>
    tpu.vector_store %arg5[%c0_8, %c0_9], %10 {strides = array<i32>} : memref<8x8xf32, #tpu.memory_space<vmem>>, vector<8x8xf32>,
    return
  }
  func.func @transform_0(%arg0: i32) -> (i32, i32, i32) {
    %c0_i32 = arith.constant 0 : i32
    %c0_i32_0 = arith.constant 0 : i32
    %c0_i32_1 = arith.constant 0 : i32
    return %arg0, %c0_i32, %c0_i32_0 : i32, i32, i32
  }
  func.func @transform_1(%arg0: i32) -> (i32, i32) {
    %c0_i32 = arith.constant 0 : i32
    %c0_i32_0 = arith.constant 0 : i32
    return %arg0, %c0_i32 : i32, i32
  }
  func.func @transform_2(%arg0: i32) -> (i32, i32) {
    %c0_i32 = arith.constant 0 : i32
    %c0_i32_0 = arith.constant 0 : i32
    %c0_i32_1 = arith.constant 0 : i32
    return %c0_i32, %c0_i32_0 : i32, i32
  }
  func.func @transform_3(%arg0: i32) -> i32 {
    %c0_i32 = arith.constant 0 : i32
    %c0_i32_0 = arith.constant 0 : i32
    return %c0_i32 : i32
  }
  func.func @transform_4(%arg0: i32) -> (i32, i32) {
    %c0_i32 = arith.constant 0 : i32
    %c0_i32_0 = arith.constant 0 : i32
    return %arg0, %c0_i32 : i32, i32
  }
}

</mosaic_0001>

<bundles_post_ra>
// kernel: tpu_custom_call.1
= control target key start
LH: loop header
LB: loop body
LE: loop exit
PB: predicated region body
PF: predicated region fallthrough
CT: control target
= control target key end

     0   :  { %s1150_s0 = inlined_call_operand.hbm [shape: f32[16,8,32], index: 0, kind: input, shape index: {}]   ;;  %s1151_s1 = inlined_call_operand.hbm [shape: f32[16,32], index: 1, kind: input, shape index: {}]   ;;  %s1152_s2 = inlined_call_operand.hbm [shape: f32[32,32], index: 2, kind: input, shape index: {}]   ;;  %s1153_s3 = inlined_call_operand.<no memory space> [shape: f32[1], index: 3, kind: input, shape index: {}]   ;;  %s1154_s4 = inlined_call_operand.vmem [shape: f32[16,8], index: 4, kind: output, shape index: {}]  }
   0x1   :  { %9 = sst [smem:[#allocation2]] %s1153_s3 }
   0x2   :  { %10 = vsyncpa [#allocation4], 0 }
   0x3   :  { %12 = vsyncpa [#allocation4 + $0x1], 0 }
   0x4   :  { %13 = vsyncpa [#allocation6], 0 }
   0x5   :  { %15 = vsyncpa [#allocation6 + $0x1], 0  ;;  %s932_s17 = smov 0   ;;  %s934_s18 = smov 0  }
   0x6   :  { %s936_s19 = smov 0   ;;  %s938_s20 = smov 0  }
   0x7 LB: > { %s951_s3 = sadd.s32 4294967295, %s893_s20   ;;  %p41_p0 = scmp.ne.s32.totalorder %s885_s18, %s881_s17  ;;  %s893_s20 = sphi %s938_s20, %s1169_s20   ;;  %s889_s19 = sphi %s936_s19, %s1168_s19   ;;  %s885_s18 = sphi %s934_s18, %s1167_s18   ;;  %s881_s17 = sphi %s932_s17, %s1166_s17  }
   0x8   : > { %p1155_p1 = scmp.eq.s32.totalorder %s951_s3, 0  ;;  %p657_p2 = scmp.ge.s32.totalorder %s893_s20, 1 }
   0x9   : > { %p146_p3 = scmp.lt.s32.totalorder %s893_s20, 3  ;;  %s895_s23 = smov [#allocation7]  }
   0xa   : > { %p959_p4 = por %p1155_p1, %p41_p0  ;;  %s158_s24 = sshll.u32 %s895_s23, 4  ;;  %s159_s24 = int_to_ptr.vmem [resolvable:$true] %s158_s24 }
   0xb   : > { %p963_p5 = pnand %p657_p2, %p146_p3  ;;  %s976_s26 = sadd.s32 1, %s893_s20  }
   0xc   : > { %s1158_s21 = scalar_select %p959_p4, 1, 0 }
   0xd   : > { %s1159_s22 = scalar_select %p963_p5, 1, 0 }
   0xe   : > { %p710_p6 = pneg %p963_p5  ;;  %s28_s27 = sadd.s32 1, %s889_s19 }
   0xf   : > { %s25_s28 = ssub.s32 %s893_s20, %s976_s26  ;;  %s763_s5 = scalar_lea.hbm %s1152_s2, 512 }
  0x10   : > { %p971_p7 = pnand %p710_p6, %p1155_p1  ;;  %p764_p8 = scmp.ne.s32.totalorder %s1152_s2, %s763_s5 }
  0x11   : > { %p770_p12 = scmp.lt.u32.totalorder %s763_s5, %s1152_s2 }
  0x12   : > { %p765_p9 = pneg %p971_p7 }
  0x14   : > { %p766_p10 = pnand %p765_p9, %p764_p8 }
  0x16   : > { %p767_p11 = pneg %p766_p10 }
  0x18   : > { %p772_p13 = pnand %p770_p12, %p767_p11 }
  0x1a   : > { %775 = shalt.err (!%p772_p13)
}
  0x1b   : > { %s776_s10 = scalar_lea.vmem %s159_s24, 512  ;;  %p784_p6 = scmp.lt.s32.totalorder %s159_s24, %s159_s24 }
  0x1c   : > { %p777_p0 = scmp.ne.s32.totalorder %s159_s24, %s776_s10  ;;  %p785_p1 = scmp.lt.s32.totalorder %s776_s10, %s776_s10 }
  0x1e   : > { %p779_p2 = pnand %p777_p0, %p765_p9  ;;  %p786_p4 = por %p785_p1, %p784_p6 }
  0x20   : > { %p780_p3 = pneg %p779_p2 }
  0x22   : > { %p787_p5 = pnand %p786_p4, %p780_p3 }
  0x24   : > { %790 = shalt.err (!%p787_p5)
}
  0x25   : > { %s896_s11 = smov 128   ;;  %s897_s12 = smov 8  }
  0x26   : > { %713 = dma.hbm_to_vmem [thread:$0]  (!%p971_p7), %s1152_s2, 512, %s159_s24, [#allocation6], %s896_s11, %s896_s11, %s897_s12  }
  0x27   : > { %p26_p1 = scmp.eq.s32.totalorder %s25_s28, 0  ;;  %p35_p4 = scmp.ne.s32.totalorder %s889_s19, %s885_s18 }
  0x28   : > { %p36_p5 = scmp.eq.s32.totalorder %s893_s20, 0  ;;  %p722_p8 = scmp.lt.s32.totalorder %s893_s20, 2 }
  0x29   : > { %s1005_s15 = scalar_select %p26_p1, %s889_s19, %s28_s27  }
  0x2a   : > { %p37_p9 = por %p36_p5, %p35_p4  ;;  %s1008_s16 = sand.u32 1, %s889_s19  }
  0x2b   : > { %s660_s17 = sshll.u32 %s1008_s16, 6  ;;  %s677_s23 = sshll.u32 %s893_s20, 10 }
  0x2c   : > { %s1015_s30 = scalar_lea.hbm %s1150_s0, %s677_s23  ;;  %s179_s24 = scalar_lea.vmem [#allocation3], %s660_s17 }
  0x2d   : > { %s186_s27 = sshll.u32 %s179_s24, 4  ;;  %p1019_p7 = pnand %p722_p8, %p37_p9  ;;  %s1017_s27 = int_to_ptr.vmem [resolvable:$true] %s186_s27 }
  0x2e   : > { %s196_s5 = sand.u32 1, %s893_s20   ;;  %s663_s6 = sshll.u32 %s1008_s16, 3 }
  0x2f   : > { %s176_s7 = scalar_lea.sflag [#allocation4], %s1008_s16  ;;  %s791_s8 = scalar_lea.hbm %s1015_s30, 1024 }
  0x30   : > { %p792_p10 = scmp.ne.s32.totalorder %s1015_s30, %s791_s8  ;;  %p793_p11 = pneg %p1019_p7 }
  0x31   : > { %s796_s13 = scalar_lea.hbm %s1150_s0, 2048  ;;  %p797_p0 = scmp.lt.u32.totalorder %s1015_s30, %s1150_s0 }
  0x32   : > { %p794_p12 = pnand %p793_p11, %p792_p10  ;;  %p798_p2 = scmp.lt.u32.totalorder %s796_s13, %s791_s8 }
  0x33   : > { %p800_p6 = scmp.lt.u32.totalorder %s791_s8, %s1015_s30 }
  0x34   : > { %p795_p13 = pneg %p794_p12  ;;  %p799_p3 = por %p798_p2, %p797_p0 }
  0x36   : > { %p801_p1 = por %p800_p6, %p799_p3 }
  0x38   : > { %p802_p4 = pnand %p801_p1, %p795_p13 }
  0x3a   : > { %805 = shalt.err (!%p802_p4)
}
  0x3b   : > { %s806_s23 = scalar_lea.vmem %s1017_s27, 1024  ;;  %s898_s25 = smov [#allocation3]  }
  0x3c   : > { %p807_p5 = scmp.ne.s32.totalorder %s1017_s27, %s806_s23  ;;  %s811_s29 = sshll.u32 %s898_s25, 4  ;;  %s812_s29 = int_to_ptr.vmem [resolvable:$false] %s811_s29 }
  0x3d   : > { %s813_s24 = scalar_lea.vmem %s812_s29, 2048  ;;  %p814_p10 = scmp.lt.s32.totalorder %s1017_s27, %s812_s29 }
  0x3e   : > { %p809_p8 = pnand %p807_p5, %p793_p11  ;;  %p815_p12 = scmp.lt.s32.totalorder %s813_s24, %s806_s23 }
  0x40   : > { %p810_p9 = pneg %p809_p8  ;;  %p816_p0 = por %p815_p12, %p814_p10 }
  0x42   : > { %p817_p2 = pnand %p816_p0, %p810_p9 }
  0x44   : > { %820 = shalt.err (!%p817_p2)
}
  0x45   : > { %717 = dma.hbm_to_vmem [thread:$0]  (!%p1019_p7), %s1015_s30, 1024, %s1017_s27, %s176_s7, %s896_s11, %s896_s11, %s897_s12  }
  0x46   : > { %s664_s8 = sshll.u32 %s893_s20, 7  ;;  %s200_s14 = scalar_lea.vmem [#allocation5], %s663_s6 }
  0x47   : > { %s1060_s13 = scalar_lea.hbm %s1151_s1, %s664_s8  ;;  %s207_s17 = sshll.u32 %s200_s14, 4  ;;  %s208_s17 = int_to_ptr.vmem [resolvable:$true] %s207_s17 }
  0x48   : > { %s197_s23 = scalar_lea.sflag [#allocation6], %s196_s5  ;;  %s821_s25 = scalar_lea.hbm %s1060_s13, 128 }
  0x49   : > { %p822_p13 = scmp.ne.s32.totalorder %s1060_s13, %s821_s25  ;;  %s826_s30 = scalar_lea.hbm %s1151_s1, 256 }
  0x4a   : > { %p827_p1 = scmp.lt.u32.totalorder %s1060_s13, %s1151_s1  ;;  %p828_p4 = scmp.lt.u32.totalorder %s826_s30, %s821_s25 }
  0x4b   : > { %p824_p3 = pnand %p822_p13, %p793_p11  ;;  %p830_p8 = scmp.lt.u32.totalorder %s821_s25, %s1060_s13 }
  0x4c   : > { %p829_p5 = por %p828_p4, %p827_p1 }
  0x4d   : > { %p825_p6 = pneg %p824_p3 }
  0x4e   : > { %p831_p9 = por %p830_p8, %p829_p5 }
  0x50   : > { %p832_p10 = pnand %p831_p9, %p825_p6 }
  0x52   : > { %835 = shalt.err (!%p832_p10)
}
  0x53   : > { %s836_s20 = scalar_lea.vmem %s208_s17, 128  ;;  %s899_s5 = smov [#allocation5]  }
  0x54   : > { %p837_p12 = scmp.ne.s32.totalorder %s208_s17, %s836_s20  ;;  %s841_s6 = sshll.u32 %s899_s5, 4  ;;  %s842_s6 = int_to_ptr.vmem [resolvable:$false] %s841_s6 }
  0x55   : > { %s843_s7 = scalar_lea.vmem %s842_s6, 256  ;;  %p844_p13 = scmp.lt.s32.totalorder %s208_s17, %s842_s6 }
  0x56   : > { %p839_p0 = pnand %p837_p12, %p793_p11  ;;  %p845_p3 = scmp.lt.s32.totalorder %s843_s7, %s836_s20 }
  0x58   : > { %p840_p2 = pneg %p839_p0  ;;  %p846_p1 = por %p845_p3, %p844_p13 }
  0x5a   : > { %p847_p4 = pnand %p846_p1, %p840_p2 }
  0x5c   : > { %850 = shalt.err (!%p847_p4)
}
  0x5d   : > { %720 = dma.hbm_to_vmem [thread:$0]  (!%p1019_p7), %s1060_s13, 128, %s208_s17, %s197_s23  }
  0x5e   : > { %p1162_p6 = scmp.ne.s32.totalorder %s1159_s22, 0 }
  0x5f   : > { %s218_s29 = sand.u32 (!%p1162_p6), 1, %s885_s18   ;;  %p1163_p11 = scmp.ne.s32.totalorder (!%p1162_p6), %s1158_s21, 0 }
  0x60   : > { %216 = sbr.rel (%p1162_p6) target bundleno = 512 (0x200), region = 36  ;;  %s666_s24 = sshll.u32 (!%p1162_p6), %s218_s29, 6 }
  0x61   : > { %s219_s8 = scalar_lea.sflag (!%p1162_p6), [#allocation4], %s218_s29  ;;  %s1088_s9 = scalar_lea.vmem (!%p1162_p6), [#allocation3], %s666_s24 }
  0x67   : > { %868 = dma.done.wait (%p1163_p11), %s219_s8, 1024  }
  0x68   : > { %870 = vsyncadd (%p1163_p11), %s219_s8, 4294966272  ;;  %s227_s28 = sand.u32 1, %s951_s3   ;;  %s667_s10 = sshll.u32 %s218_s29, 3 }
  0x69   : > { %s228_s13 = scalar_lea.sflag [#allocation6], %s227_s28  ;;  %s231_s14 = scalar_lea.vmem [#allocation5], %s667_s10 }
  0x6a   : > { %872 = dma.done.wait (%p1163_p11), %s228_s13, 128  }
  0x6b   : > { %874 = vsyncadd (%p1163_p11), %s228_s13, 4294967168  ;;  %p1164_p7 = scmp.eq.s32.totalorder %s951_s3, 0 }
  0x6d   : > { %876 = dma.done.wait (%p1164_p7), [#allocation6], 512   ;;  %p1165_p5 = pmov %p1164_p7 }
  0x6e   : > { %v900_v0 = vmov 0.0|0.0   ;;  %vm901_vm0 = vmmov 0   ;;  %v902_v1 = vmov 0.0   ;;  %vm274_vm1 = vcmask 261120   ;;  %v270_v2 = vld [vmem:[#allocation7] sm:$0xff]  ;;  %v271_v3 = vld [vmem:[#allocation7 + $0x8] sm:$0xff] }
  0x6f   : > { %878 = vsyncadd (%p1165_p5), [#allocation6], 4294966784  ;;  %694 = vmatprep.subr.bf16.mxu0 %v900_v0  ;;  %691 = vmatprep.mubr.msk.f32.mxu0 %vm901_vm0, %v902_v1  ;;  %v695_v4 = vpack.c.bf16 %v271_v3, %v270_v2  ;;  %v272_v5 = vld [vmem:[#allocation7 + $0x10] sm:$0xff]  ;;  %v273_v6 = vld [vmem:[#allocation7 + $0x18] sm:$0xff]  ;;  %v373_v9 = vlaneseq  ;;  %v903_v13 = vmov 1966171168  }
  0x70   : > { %vm696_vm2 = vmpackc.low %vm274_vm1, %vm274_vm1  ;;  %v699_v7 = vpack.c.bf16 %v273_v6, %v272_v5  ;;  %v269_v8 = vld [vmem:[%s231_s14] sm:$0xff]  ;;  %v371_v14 = vunpack.c.l.s4 %v903_v13  ;;  %v362_v33 = vld [vmem:[%s1088_s9 + $0x10] sm:$0xff]  ;;  %s490_s21 = sld [smem:[#allocation2]]  ;;  %vm542_vm3 = vcmask 1041409   ;;  %vm544_vm4 = vcmask 1042434   ;;  %p265_p8 = scmp.lt.s32.totalorder %s951_s3, 1 }
  0x71   : > { %697 = vmatpush3.bf16.xpose.msk.msra.mxu0 %vm696_vm2, %v695_v4  ;;  %v374_v10 = vshrl.u32 %v373_v9, 7  ;;  %v509_v11 = vand.u32 127, %v373_v9  ;;  %v360_v25 = vld [vmem:[%s1088_s9] sm:$0xff]  ;;  %v361_v31 = vld [vmem:[%s1088_s9 + $0x8] sm:$0xff]  ;;  %v363_v41 = vld [vmem:[%s1088_s9 + $0x18] sm:$0xff]  ;;  %vm546_vm5 = vcmask 1043459  }
  0x72   : > { %698 = vmatprep.subr.bf16.mxu0 %v900_v0  ;;  %v372_v15 = vunpack.c.0.s8 %v371_v14  ;;  %v364_v45 = vld [vmem:[%s1088_s9 + $0x20] sm:$0xff]  ;;  %v365_v52 = vld [vmem:[%s1088_s9 + $0x28] sm:$0xff]  ;;  %v366_v54 = vld [vmem:[%s1088_s9 + $0x30] sm:$0xff]  ;;  %vm548_vm6 = vcmask 1044484   ;;  %s1171_s3 = smov (!%p265_p8, %s951_s3), 1  ;;  %vm550_vm7 = vcmask 1045509  }
  0x73   : > { %v1106_v12 = vsub.s32 %v509_v11, %v374_v10  ;;  %v420_v20 = vsub.s32 0, %v374_v10  ;;  %v367_v60 = vld [vmem:[%s1088_s9 + $0x38] sm:$0xff]  ;;  %vm552_vm8 = vcmask 1046534   ;;  %s669_s22 = sshll.u32 %s1171_s3, 3  ;;  %vm554_vm9 = vcmask 1047559  }
  0x74   : > { %v375_v16 = vsub.s32 %v372_v15, %v374_v10  ;;  %s268_s25 = scalar_lea.vmem %s1154_s4, %s669_s22  ;;  %vm557_vm10 = vcmask 64512  }
  0x76   : > { %v491_v1 = vstv %s490_s21 }
  0x79   : > { %701 = vmatpush3.bf16.xpose.msk.msra.mxu0 %vm696_vm2, %v699_v7 }
  0x80   : > { %692 = vmatmul.mubr.msk.f32.vlgmr.msra.gmra.mrb[0].mxu0 %vm274_vm1, %v269_v8 }
 0x153   : > { %v356_v17 = vpop.f32.mrb[0].mxu0 }
 0x154   : > { %v369_v18 = vcombine.high %v356_v17, %v356_v17  ;;  %v376_v19 = vrot.slane %v356_v17, %v375_v16  ;;  %v693_v21 = vpop.f32.mrb[1].mxu0 }
 0x156   : > { %v383_v22 = vrot.slane %v369_v18, %v375_v16  ;;  %v384_v23 = vcombine.high %v376_v19, %v376_v19  ;;  %v392_v24 = vrot.slane %v376_v19, %v375_v16 }
 0x158   : > { %v385_v26 = vcombine.high %v383_v22, %v383_v22  ;;  %v399_v27 = vrot.slane %v383_v22, %v375_v16  ;;  %v406_v28 = vrot.slane %v384_v23, %v375_v16  ;;  %v421_v29 = vrot.slane %v392_v24, %v420_v20 }
 0x159   : > { %v414_v30 = vcombine.high %v392_v24, %v392_v24 }
 0x15a   : > { %v458_v32 = vmul.f32 %v421_v29, %v360_v25  ;;  %v425_v34 = vrot.slane %v406_v28, %v420_v20  ;;  %v416_v35 = vcombine.high %v406_v28, %v406_v28  ;;  %v437_v37 = vrot.slane %v399_v27, %v420_v20 }
 0x15b   : > { %v429_v36 = vrot.slane %v414_v30, %v420_v20  ;;  %v413_v38 = vrot.slane %v385_v26, %v375_v16  ;;  %v415_v43 = vcombine.high %v399_v27, %v399_v27 }
 0x15c   : > { %v466_v39 = vsel %vm274_vm1, %v458_v32, 0.0  ;;  %v459_v40 = vmul.f32 %v425_v34, %v361_v31  ;;  %v433_v42 = vrot.slane %v416_v35, %v420_v20  ;;  %v462_v51 = vmul.f32 %v437_v37, %v364_v45 }
 0x15d   : > { %467 = vadd.xlane.f32.xlu0 %v466_v39  ;;  %v460_v44 = vmul.f32 %v429_v36, %v362_v33  ;;  %v441_v48 = vrot.slane %v413_v38, %v420_v20  ;;  %v417_v49 = vcombine.high %v413_v38, %v413_v38  ;;  %v445_v53 = vrot.slane %v415_v43, %v420_v20 }
 0x15e   : > { %v461_v47 = vmul.f32 %v433_v42, %v363_v41  ;;  %v469_v50 = vsel %vm274_vm1, %v459_v40, 0.0  ;;  %v478_v58 = vsel %vm274_vm1, %v462_v51, 0.0 }
 0x15f   : > { %v472_v46 = vsel %vm274_vm1, %v460_v44, 0.0  ;;  %v463_v56 = vmul.f32 %v441_v48, %v365_v52  ;;  %v449_v57 = vrot.slane %v417_v49, %v420_v20  ;;  %v464_v59 = vmul.f32 %v445_v53, %v366_v54 }
 0x160   : > { %473 = vadd.xlane.f32.xlu1 %v472_v46  ;;  %v475_v55 = vsel %vm274_vm1, %v461_v47, 0.0 }
 0x161   : > { %470 = vadd.xlane.f32.xlu0 %v469_v50  ;;  %v481_v61 = vsel %vm274_vm1, %v463_v56, 0.0  ;;  %v465_v62 = vmul.f32 %v449_v57, %v367_v60  ;;  %v484_v63 = vsel %vm274_vm1, %v464_v59, 0.0 }
 0x163   : > { %v487_v0 = vsel %vm274_vm1, %v465_v62, 0.0 }
 0x164   : > { %476 = vadd.xlane.f32.xlu1 %v475_v55 }
 0x165   : > { %479 = vadd.xlane.f32.xlu0 %v478_v58 }
 0x168   : > { %482 = vadd.xlane.f32.xlu1 %v481_v61 }
 0x169   : > { %485 = vadd.xlane.f32.xlu0 %v484_v63 }
 0x16c   : > { %488 = vadd.xlane.f32.xlu1 %v487_v0 }
 0x1ea   : > { %v468_v2 = vpop.xlane.xlu0 %467 }
 0x1eb   : > { %v492_v3 = vadd.f32 %v491_v1, %v468_v2 }
 0x1ed   : > { %v474_v4 = vpop.xlane.xlu1 %473  ;;  %v513_v8 = vrot.slane %v492_v3, %v1106_v12 }
 0x1ee   : > { %v494_v5 = vadd.f32 %v491_v1, %v474_v4  ;;  %v471_v6 = vpop.xlane.xlu0 %470 }
 0x1ef   : > { %v493_v7 = vadd.f32 %v491_v1, %v471_v6 }
 0x1f0   : > { %v521_v11 = vrot.slane %v494_v5, %v1106_v12 }
 0x1f1   : > { %v517_v9 = vrot.slane %v493_v7, %v1106_v12  ;;  %v477_v10 = vpop.xlane.xlu1 %476 }
 0x1f2   : > { %v495_v13 = vadd.f32 %v491_v1, %v477_v10  ;;  %v480_v14 = vpop.xlane.xlu0 %479 }
 0x1f3   : > { %v543_v15 = vsel %vm542_vm3, %v517_v9, %v513_v8  ;;  %v496_v16 = vadd.f32 %v491_v1, %v480_v14 }
 0x1f4   : > { %v545_v17 = vsel %vm544_vm4, %v521_v11, %v543_v15  ;;  %v525_v18 = vrot.slane %v495_v13, %v1106_v12 }
 0x1f5   : > { %v529_v19 = vrot.slane %v496_v16, %v1106_v12  ;;  %v483_v20 = vpop.xlane.xlu1 %482 }
 0x1f6   : > { %v547_v21 = vsel %vm546_vm5, %v525_v18, %v545_v17  ;;  %v497_v22 = vadd.f32 %v491_v1, %v483_v20  ;;  %v486_v23 = vpop.xlane.xlu0 %485 }
 0x1f7   : > { %v549_v24 = vsel %vm548_vm6, %v529_v19, %v547_v21  ;;  %v498_v25 = vadd.f32 %v491_v1, %v486_v23 }
 0x1f8   : > { %v533_v26 = vrot.slane %v497_v22, %v1106_v12 }
 0x1f9   : > { %v537_v27 = vrot.slane %v498_v25, %v1106_v12  ;;  %v489_v28 = vpop.xlane.xlu1 %488 }
 0x1fa   : > { %v551_v29 = vsel %vm550_vm7, %v533_v26, %v549_v24  ;;  %v499_v30 = vadd.f32 %v491_v1, %v489_v28 }
 0x1fb   : > { %v553_v31 = vsel %vm552_vm8, %v537_v27, %v551_v29 }
 0x1fc   : > { %v541_v32 = vrot.slane %v499_v30, %v1106_v12 }
 0x1fe   : > { %v555_v33 = vsel %vm554_vm9, %v541_v32, %v553_v31 }
 0x1ff   : > { %558 = vst.msk [vmem:[%s268_s25] sm:$0xff] %vm557_vm10, %v555_v33 }
 0x200 PF: > { %p18_p9 = scmp.ge.s32.totalorder %s976_s26, 4   ;;  %s1166_s17 = smov %s885_s18 }
 0x201   : > { %s1167_s18 = smov %s889_s19  ;;  %s1168_s19 = smov %s1005_s15 }
 0x202   : > { %s1169_s20 = smov %s976_s26  ;;  %20 = sbr.rel (!%p18_p9) target bundleno = 7 (0x7), region = 93 }
 0x209   :  { %578 = vsyncpa [#allocation4], 1 }
 0x20a   :  { %580 = vsyncpa [#allocation4 + $0x1], 1 }
 0x20b   :  { %581 = vsyncpa [#allocation6], 1 }
 0x20c   :  { %583 = vsyncpa [#allocation6 + $0x1], 1 }

</bundles_post_ra>
